<compile_context>
chip_gen: v7x
topology: tpu7x:2x2x1
jax: 0.10.0
libtpu: 0.0.40
codegen_flags: <defaults>
</compile_context>

<pallas_src>
import functools

import jax
import jax.numpy as jnp
from jax.experimental import pallas as pl
from jax.experimental.pallas import tpu as pltpu


def concat_composer_kernel(g_ref, t_ref,
                           s1g_ref, sh1g_ref, s1t_ref, sh1t_ref,
                           w1g_ref, w1t_ref, b1_ref,
                           w2_ref, b2_ref,
                           o_ref):
    mm_dtype = w1g_ref.dtype

    # BatchNorm1d #1 (folded affine) + ReLU, applied per concat-half
    # (split-K form of the concatenated [B, 2D] activation; no jnp.concatenate).
    fg = jnp.maximum(g_ref[...] * s1g_ref[...] + sh1g_ref[...], 0.0)
    ft = jnp.maximum(t_ref[...] * s1t_ref[...] + sh1t_ref[...], 0.0)

    # Linear(2D, 2D) with BN2 scale folded into the weights and
    # (BN2 shift + Linear1 bias) folded into b1_ref, then ReLU.
    # Dropout(0.1) is identity in eval mode.
    h = (jnp.dot(fg.astype(mm_dtype), w1g_ref[...],
                 preferred_element_type=jnp.float32)
         + jnp.dot(ft.astype(mm_dtype), w1t_ref[...],
                   preferred_element_type=jnp.float32)
         + b1_ref[...])
    h = jnp.maximum(h, 0.0)

    # Linear(2D, D)
    out = jnp.dot(h.astype(mm_dtype), w2_ref[...],
                  preferred_element_type=jnp.float32) + b2_ref[...]
    o_ref[...] = out.astype(o_ref.dtype)


def concat_compose(graph_feats, text_feats, params, *,
                   block_b=128, matmul_dtype=jnp.bfloat16):
    """Pallas-backed forward of Concat.compose_graph_text_features (eval mode)."""
    B, D = graph_feats.shape
    D2 = 2 * D
    eps = 1e-5

    # ---- fold BatchNorm running stats into per-feature affines (wrapper glue) ----
    s1 = params["bn1_gamma"] / jnp.sqrt(params["bn1_var"] + eps)          # [2D]
    sh1 = params["bn1_beta"] - params["bn1_mean"] * s1                    # [2D]
    s2 = params["bn2_gamma"] / jnp.sqrt(params["bn2_var"] + eps)          # [2D]
    sh2 = params["bn2_beta"] - params["bn2_mean"] * s2                    # [2D]

    # Fold BN2 scale + Linear1 bias:  h = f @ (w1 * s2) + (b1 * s2 + sh2)
    w1s = params["w1"] * s2[None, :]                                      # [2D, 2D]
    b1f = (params["b1"] * s2 + sh2).reshape(1, D2).astype(jnp.float32)

    # Split w1 along K (rows) into graph-half / text-half -> no in-kernel concat.
    w1g = w1s[:D].astype(matmul_dtype)                                    # [D, 2D]
    w1t = w1s[D:].astype(matmul_dtype)                                    # [D, 2D]
    w2 = params["w2"].astype(matmul_dtype)                                # [2D, D]
    b2 = params["b2"].reshape(1, D).astype(jnp.float32)

    s1g = s1[:D].reshape(1, D).astype(jnp.float32)
    s1t = s1[D:].reshape(1, D).astype(jnp.float32)
    sh1g = sh1[:D].reshape(1, D).astype(jnp.float32)
    sh1t = sh1[D:].reshape(1, D).astype(jnp.float32)

    # ---- batch tiling: pad B up to a multiple of the batch tile ----
    tb = block_b if B >= block_b else max(8, ((B + 7) // 8) * 8)
    nb = pl.cdiv(B, tb)
    B_pad = nb * tb
    if B_pad != B:
        pad = ((0, B_pad - B), (0, 0))
        graph_feats = jnp.pad(graph_feats, pad)
        text_feats = jnp.pad(text_feats, pad)

    act_spec = pl.BlockSpec((tb, D), lambda i: (i, 0))      # streamed per grid step
    out_spec = pl.BlockSpec((tb, D), lambda i: (i, 0))
    vec_d = pl.BlockSpec((1, D), lambda i: (0, 0))          # VMEM-resident
    vec_d2 = pl.BlockSpec((1, D2), lambda i: (0, 0))
    w1_spec = pl.BlockSpec((D, D2), lambda i: (0, 0))
    w2_spec = pl.BlockSpec((D2, D), lambda i: (0, 0))

    mm_bytes = jnp.dtype(matmul_dtype).itemsize
    cost = pl.CostEstimate(
        flops=2 * B_pad * D2 * (D2 + D),
        transcendentals=0,
        bytes_accessed=(3 * B_pad * D * 4                    # g, t in + out
                        + (2 * D * D2 + D2 * D) * mm_bytes   # w1 halves + w2
                        + (4 * D + 2 * D2) * 4),             # scales/shifts/biases
    )

    out = pl.pallas_call(
        concat_composer_kernel,
        out_shape=jax.ShapeDtypeStruct((B_pad, D), graph_feats.dtype),
        grid=(nb,),
        in_specs=[
            act_spec,   # graph features   [B_pad, D]
            act_spec,   # text features    [B_pad, D]
            vec_d,      # bn1 scale (graph half)
            vec_d,      # bn1 shift (graph half)
            vec_d,      # bn1 scale (text half)
            vec_d,      # bn1 shift (text half)
            w1_spec,    # w1 graph half  [D, 2D]  (BN2 scale folded, matmul dtype)
            w1_spec,    # w1 text half   [D, 2D]
            vec_d2,     # fused bias (b1*s2 + sh2)  [1, 2D]
            w2_spec,    # w2             [2D, D]
            vec_d,      # b2             [1, D]
        ],
        out_specs=out_spec,
        compiler_params=pltpu.CompilerParams(
            dimension_semantics=("parallel",),   # shard batch tiles across TCs (v7x)
            vmem_limit_bytes=32 * 1024 * 1024,
        ),
        cost_estimate=cost,
    )(graph_feats, text_feats, s1g, sh1g, s1t, sh1t, w1g, w1t, b1f, w2, b2)

    return out[:B]


def reference_compose(graph_feats, text_feats, params):
    """Pure-JAX (f32) reference for correctness checking."""
    eps = 1e-5
    f = jnp.concatenate([graph_feats, text_feats], axis=1)
    f = (f - params["bn1_mean"]) / jnp.sqrt(params["bn1_var"] + eps) \
        * params["bn1_gamma"] + params["bn1_beta"]
    f = jnp.maximum(f, 0.0)
    h = f @ params["w1"] + params["b1"]
    h = (h - params["bn2_mean"]) / jnp.sqrt(params["bn2_var"] + eps) \
        * params["bn2_gamma"] + params["bn2_beta"]
    h = jnp.maximum(h, 0.0)
    return h @ params["w2"] + params["b2"]


def init_params(key, embed_dim):
    """Deterministic synthetic parameters matching the module's __init__ shapes."""
    D = embed_dim
    D2 = 2 * D
    ks = jax.random.split(key, 8)
    return {
        # BatchNorm1d(2*embed_dim) #1
        "bn1_gamma": 1.0 + 0.1 * jax.random.normal(ks[0], (D2,), jnp.float32),
        "bn1_beta": 0.05 * jax.random.normal(ks[1], (D2,), jnp.float32),
        "bn1_mean": 0.1 * jax.random.normal(ks[2], (D2,), jnp.float32),
        "bn1_var": jnp.abs(1.0 + 0.1 * jax.random.normal(ks[3], (D2,), jnp.float32)),
        # Linear(2D, 2D): stored [in, out]  (x @ W == PyTorch x @ W.T)
        "w1": jax.random.normal(ks[4], (D2, D2), jnp.float32) / jnp.sqrt(D2),
        "b1": 0.01 * jnp.arange(D2, dtype=jnp.float32),
        # BatchNorm1d(2*embed_dim) #2
        "bn2_gamma": 1.0 + 0.1 * jax.random.normal(ks[5], (D2,), jnp.float32),
        "bn2_beta": 0.05 * jax.random.normal(ks[6], (D2,), jnp.float32),
        "bn2_mean": 0.1 * jax.random.normal(ks[7], (D2,), jnp.float32),
        "bn2_var": jnp.abs(1.0 + 0.1 * jax.random.normal(ks[0], (D2,), jnp.float32)),
        # Linear(2D, D): stored [in, out]
        "w2": jax.random.normal(ks[5], (D2, D), jnp.float32) / jnp.sqrt(D2),
        "b2": 0.01 * jnp.arange(D, dtype=jnp.float32),
    }


if __name__ == "__main__":
    # TODO(synk): graph_model (Graph_Model) and text_model (TextLSTMModel) feature
    # extractors are external encoders; the kernel implements the Concat composer
    # hot path on their [B, embed_dim] feature outputs.
    B, D = 128, 128   # lane-dense feature dims, MXU-filling batch tile
    key = jax.random.PRNGKey(0)
    kg, kt, kp = jax.random.split(key, 3)

    graph_feats = jax.random.normal(kg, (B, D), jnp.float32)
    text_feats = jax.random.normal(kt, (B, D), jnp.float32)
    params = init_params(kp, D)

    ref = reference_compose(graph_feats, text_feats, params)

    # f32-matmul path: tight check against the reference.
    out_f32 = jax.block_until_ready(
        concat_compose(graph_feats, text_feats, params, matmul_dtype=jnp.float32))
    assert out_f32.shape == (B, D)
    assert jnp.allclose(out_f32, ref, atol=1e-3, rtol=1e-3), "f32 path mismatch"

    # bf16-matmul path (default perf configuration): relaxed tolerance.
    out_bf16 = jax.block_until_ready(
        concat_compose(graph_feats, text_feats, params, matmul_dtype=jnp.bfloat16))
    assert out_bf16.shape == (B, D)
    assert jnp.allclose(out_bf16, ref, atol=5e-2, rtol=5e-2), "bf16 path mismatch"

    print("KERNEL_OK")
</pallas_src>

<mosaic_0001>
module attributes {stable_mosaic.version = 11 : i64} {
  func.func @concat_composer_kernel(%arg0: i32, %arg1: memref<128x128xf32, #tpu.memory_space<vmem>>, %arg2: memref<128x128xf32, #tpu.memory_space<vmem>>, %arg3: memref<1x128xf32, #tpu.memory_space<vmem>>, %arg4: memref<1x128xf32, #tpu.memory_space<vmem>>, %arg5: memref<1x128xf32, #tpu.memory_space<vmem>>, %arg6: memref<1x128xf32, #tpu.memory_space<vmem>>, %arg7: memref<128x256xf32, #tpu.memory_space<vmem>>, %arg8: memref<128x256xf32, #tpu.memory_space<vmem>>, %arg9: memref<1x256xf32, #tpu.memory_space<vmem>>, %arg10: memref<256x128xf32, #tpu.memory_space<vmem>>, %arg11: memref<1x128xf32, #tpu.memory_space<vmem>>, %arg12: memref<128x128xf32, #tpu.memory_space<vmem>>) attributes {dimension_semantics = [#tpu.dimension_semantics<parallel>], iteration_bounds = array<i64: 1>, scalar_prefetch = 0 : i64, scratch_operands = 0 : i64, tpu.core_type = #tpu.core_type<tc>, window_params = [{transform_indices = @transform_0, window_bounds = array<i64: 128, 128>}, {transform_indices = @transform_1, window_bounds = array<i64: 128, 128>}, {pipeline_mode = #tpu.pipeline_mode<synchronous>, transform_indices = @transform_2, window_bounds = array<i64: 1, 128>}, {pipeline_mode = #tpu.pipeline_mode<synchronous>, transform_indices = @transform_3, window_bounds = array<i64: 1, 128>}, {pipeline_mode = #tpu.pipeline_mode<synchronous>, transform_indices = @transform_4, window_bounds = array<i64: 1, 128>}, {pipeline_mode = #tpu.pipeline_mode<synchronous>, transform_indices = @transform_5, window_bounds = array<i64: 1, 128>}, {pipeline_mode = #tpu.pipeline_mode<synchronous>, transform_indices = @transform_6, window_bounds = array<i64: 128, 256>}, {pipeline_mode = #tpu.pipeline_mode<synchronous>, transform_indices = @transform_7, window_bounds = array<i64: 128, 256>}, {pipeline_mode = #tpu.pipeline_mode<synchronous>, transform_indices = @transform_8, window_bounds = array<i64: 1, 256>}, {pipeline_mode = #tpu.pipeline_mode<synchronous>, transform_indices = @transform_9, window_bounds = array<i64: 256, 128>}, {pipeline_mode = #tpu.pipeline_mode<synchronous>, transform_indices = @transform_10, window_bounds = array<i64: 1, 128>}, {transform_indices = @transform_11, window_bounds = array<i64: 128, 128>}]} {
    %c0 = arith.constant 0 : index
    %c0_0 = arith.constant 0 : index
    %0 = vector.load %arg1[%c0, %c0_0] : memref<128x128xf32, #tpu.memory_space<vmem>>, vector<128x128xf32>
    %c0_1 = arith.constant 0 : index
    %c0_2 = arith.constant 0 : index
    %1 = vector.load %arg3[%c0_1, %c0_2] : memref<1x128xf32, #tpu.memory_space<vmem>>, vector<1x128xf32>
    %2 = vector.broadcast %1 : vector<1x128xf32> to vector<128x128xf32>
    %3 = arith.mulf %0, %2 : vector<128x128xf32>
    %c0_3 = arith.constant 0 : index
    %c0_4 = arith.constant 0 : index
    %4 = vector.load %arg4[%c0_3, %c0_4] : memref<1x128xf32, #tpu.memory_space<vmem>>, vector<1x128xf32>
    %5 = vector.broadcast %4 : vector<1x128xf32> to vector<128x128xf32>
    %6 = arith.addf %3, %5 : vector<128x128xf32>
    %cst = arith.constant 0.000000e+00 : f32
    %7 = vector.broadcast %cst : f32 to vector<128x128xf32>
    %8 = arith.maximumf %6, %7 : vector<128x128xf32>
    %c0_5 = arith.constant 0 : index
    %c0_6 = arith.constant 0 : index
    %9 = vector.load %arg2[%c0_5, %c0_6] : memref<128x128xf32, #tpu.memory_space<vmem>>, vector<128x128xf32>
    %c0_7 = arith.constant 0 : index
    %c0_8 = arith.constant 0 : index
    %10 = vector.load %arg5[%c0_7, %c0_8] : memref<1x128xf32, #tpu.memory_space<vmem>>, vector<1x128xf32>
    %11 = vector.broadcast %10 : vector<1x128xf32> to vector<128x128xf32>
    %12 = arith.mulf %9, %11 : vector<128x128xf32>
    %c0_9 = arith.constant 0 : index
    %c0_10 = arith.constant 0 : index
    %13 = vector.load %arg6[%c0_9, %c0_10] : memref<1x128xf32, #tpu.memory_space<vmem>>, vector<1x128xf32>
    %14 = vector.broadcast %13 : vector<1x128xf32> to vector<128x128xf32>
    %15 = arith.addf %12, %14 : vector<128x128xf32>
    %cst_11 = arith.constant 0.000000e+00 : f32
    %16 = vector.broadcast %cst_11 : f32 to vector<128x128xf32>
    %17 = arith.maximumf %15, %16 : vector<128x128xf32>
    %c0_12 = arith.constant 0 : index
    %c0_13 = arith.constant 0 : index
    %18 = vector.load %arg7[%c0_12, %c0_13] : memref<128x256xf32, #tpu.memory_space<vmem>>, vector<128x256xf32>
    %cst_14 = arith.constant dense<0.000000e+00> : vector<128x256xf32>
    %19 = tpu.matmul %8, %18, %cst_14 {dimension_numbers = #tpu.dot_dimension_numbers<[1], [0], [0], [1], [0, 0, 1, 1], [], []>} : vector<128x128xf32>, vector<128x256xf32>, vector<128x256xf32> -> vector<128x256xf32>
    %c0_15 = arith.constant 0 : index
    %c0_16 = arith.constant 0 : index
    %20 = vector.load %arg8[%c0_15, %c0_16] : memref<128x256xf32, #tpu.memory_space<vmem>>, vector<128x256xf32>
    %cst_17 = arith.constant dense<0.000000e+00> : vector<128x256xf32>
    %21 = tpu.matmul %17, %20, %cst_17 {dimension_numbers = #tpu.dot_dimension_numbers<[1], [0], [0], [1], [0, 0, 1, 1], [], []>} : vector<128x128xf32>, vector<128x256xf32>, vector<128x256xf32> -> vector<128x256xf32>
    %22 = arith.addf %19, %21 : vector<128x256xf32>
    %c0_18 = arith.constant 0 : index
    %c0_19 = arith.constant 0 : index
    %23 = vector.load %arg9[%c0_18, %c0_19] : memref<1x256xf32, #tpu.memory_space<vmem>>, vector<1x256xf32>
    %24 = vector.broadcast %23 : vector<1x256xf32> to vector<128x256xf32>
    %25 = arith.addf %22, %24 : vector<128x256xf32>
    %cst_20 = arith.constant 0.000000e+00 : f32
    %26 = vector.broadcast %cst_20 : f32 to vector<128x256xf32>
    %27 = arith.maximumf %25, %26 : vector<128x256xf32>
    %c0_21 = arith.constant 0 : index
    %c0_22 = arith.constant 0 : index
    %28 = vector.load %arg10[%c0_21, %c0_22] : memref<256x128xf32, #tpu.memory_space<vmem>>, vector<256x128xf32>
    %cst_23 = arith.constant dense<0.000000e+00> : vector<128x128xf32>
    %29 = tpu.matmul %27, %28, %cst_23 {dimension_numbers = #tpu.dot_dimension_numbers<[1], [0], [0], [1], [0, 0, 1, 1], [], []>} : vector<128x256xf32>, vector<256x128xf32>, vector<128x128xf32> -> vector<128x128xf32>
    %c0_24 = arith.constant 0 : index
    %c0_25 = arith.constant 0 : index
    %30 = vector.load %arg11[%c0_24, %c0_25] : memref<1x128xf32, #tpu.memory_space<vmem>>, vector<1x128xf32>
    %31 = vector.broadcast %30 : vector<1x128xf32> to vector<128x128xf32>
    %32 = arith.addf %29, %31 : vector<128x128xf32>
    %c0_26 = arith.constant 0 : index
    %c0_27 = arith.constant 0 : index
    %33 = vector.load %arg12[%c0_26, %c0_27] : memref<128x128xf32, #tpu.memory_space<vmem>>, vector<128x128xf32>
    tpu.vector_store %arg12[%c0_26, %c0_27], %32 {strides = array<i32>} : memref<128x128xf32, #tpu.memory_space<vmem>>, vector<128x128xf32>,
    return
  }
  func.func @transform_0(%arg0: i32) -> (i32, i32) {
    %c0_i32 = arith.constant 0 : i32
    %c0_i32_0 = arith.constant 0 : i32
    return %arg0, %c0_i32 : i32, i32
  }
  func.func @transform_1(%arg0: i32) -> (i32, i32) {
    %c0_i32 = arith.constant 0 : i32
    %c0_i32_0 = arith.constant 0 : i32
    return %arg0, %c0_i32 : i32, i32
  }
  func.func @transform_2(%arg0: i32) -> (i32, i32) {
    %c0_i32 = arith.constant 0 : i32
    %c0_i32_0 = arith.constant 0 : i32
    %c0_i32_1 = arith.constant 0 : i32
    return %c0_i32, %c0_i32_0 : i32, i32
  }
  func.func @transform_3(%arg0: i32) -> (i32, i32) {
    %c0_i32 = arith.constant 0 : i32
    %c0_i32_0 = arith.constant 0 : i32
    %c0_i32_1 = arith.constant 0 : i32
    return %c0_i32, %c0_i32_0 : i32, i32
  }
  func.func @transform_4(%arg0: i32) -> (i32, i32) {
    %c0_i32 = arith.constant 0 : i32
    %c0_i32_0 = arith.constant 0 : i32
    %c0_i32_1 = arith.constant 0 : i32
    return %c0_i32, %c0_i32_0 : i32, i32
  }
  func.func @transform_5(%arg0: i32) -> (i32, i32) {
    %c0_i32 = arith.constant 0 : i32
    %c0_i32_0 = arith.constant 0 : i32
    %c0_i32_1 = arith.constant 0 : i32
    return %c0_i32, %c0_i32_0 : i32, i32
  }
  func.func @transform_6(%arg0: i32) -> (i32, i32) {
    %c0_i32 = arith.constant 0 : i32
    %c0_i32_0 = arith.constant 0 : i32
    %c0_i32_1 = arith.constant 0 : i32
    return %c0_i32, %c0_i32_0 : i32, i32
  }
  func.func @transform_7(%arg0: i32) -> (i32, i32) {
    %c0_i32 = arith.constant 0 : i32
    %c0_i32_0 = arith.constant 0 : i32
    %c0_i32_1 = arith.constant 0 : i32
    return %c0_i32, %c0_i32_0 : i32, i32
  }
  func.func @transform_8(%arg0: i32) -> (i32, i32) {
    %c0_i32 = arith.constant 0 : i32
    %c0_i32_0 = arith.constant 0 : i32
    %c0_i32_1 = arith.constant 0 : i32
    return %c0_i32, %c0_i32_0 : i32, i32
  }
  func.func @transform_9(%arg0: i32) -> (i32, i32) {
    %c0_i32 = arith.constant 0 : i32
    %c0_i32_0 = arith.constant 0 : i32
    %c0_i32_1 = arith.constant 0 : i32
    return %c0_i32, %c0_i32_0 : i32, i32
  }
  func.func @transform_10(%arg0: i32) -> (i32, i32) {
    %c0_i32 = arith.constant 0 : i32
    %c0_i32_0 = arith.constant 0 : i32
    %c0_i32_1 = arith.constant 0 : i32
    return %c0_i32, %c0_i32_0 : i32, i32
  }
  func.func @transform_11(%arg0: i32) -> (i32, i32) {
    %c0_i32 = arith.constant 0 : i32
    %c0_i32_0 = arith.constant 0 : i32
    return %arg0, %c0_i32 : i32, i32
  }
}

</mosaic_0001>

<bundles_post_ra>
// kernel: tpu_custom_call.1
= control target key start
LH: loop header
LB: loop body
LE: loop exit
PB: predicated region body
PF: predicated region fallthrough
CT: control target
= control target key end

     0   :  { %16 = vsyncpa [#allocation3], 0  ;;  %s1709_s0 = inlined_call_operand.hbm [shape: f32[128,128], index: 0, kind: input, shape index: {}]   ;;  %s1710_s1 = inlined_call_operand.hbm [shape: f32[128,128], index: 1, kind: input, shape index: {}]   ;;  %s1711_s2 = inlined_call_operand.vmem [shape: f32[1,128], index: 2, kind: input, shape index: {}]   ;;  %s1712_s3 = inlined_call_operand.vmem [shape: f32[1,128], index: 3, kind: input, shape index: {}]   ;;  %s1713_s4 = inlined_call_operand.vmem [shape: f32[1,128], index: 4, kind: input, shape index: {}]   ;;  %s1714_s5 = inlined_call_operand.vmem [shape: f32[1,128], index: 5, kind: input, shape index: {}]   ;;  %s1715_s6 = inlined_call_operand.hbm [shape: f32[128,256], index: 6, kind: input, shape index: {}]   ;;  %s1716_s7 = inlined_call_operand.hbm [shape: f32[128,256], index: 7, kind: input, shape index: {}]   ;;  %s1717_s8 = inlined_call_operand.vmem [shape: f32[1,256], index: 8, kind: input, shape index: {}]   ;;  %s1718_s9 = inlined_call_operand.hbm [shape: f32[256,128], index: 9, kind: input, shape index: {}]   ;;  %s1719_s10 = inlined_call_operand.vmem [shape: f32[1,128], index: 10, kind: input, shape index: {}]   ;;  %s1720_s11 = inlined_call_operand.hbm [shape: f32[128,128], index: 11, kind: output, shape index: {}]  }
   0x1   :  { %17 = vsyncpa [#allocation6], 0 }
   0x2   :  { %18 = vsyncpa [#allocation9], 0 }
   0x3   :  { %19 = vsyncpa [#allocation4], 0  ;;  %s1324_s17 = smov [#allocation5]   ;;  %s1184_s21 = scalar_lea.hbm %s1710_s1, 2048 }
   0x4   :  { %s37_s18 = sshll.u32 %s1324_s17, 4  ;;  %p1185_p0 = scmp.ne.s32.totalorder %s1710_s1, %s1184_s21  ;;  %s38_s18 = int_to_ptr.vmem [resolvable:$true] %s37_s18 }
   0x5   :  { %p1188_p1 = scmp.lt.u32.totalorder %s1184_s21, %s1710_s1 }
   0x7   :  { %p1190_p2 = pnand %p1188_p1, %p1185_p0 }
   0x9   :  { %1193 = shalt.err (!%p1190_p2)
}
   0xa   :  { %s1194_s26 = scalar_lea.vmem %s38_s18, 2048  ;;  %p1199_p4 = scmp.lt.s32.totalorder %s38_s18, %s38_s18 }
   0xb   :  { %p1195_p3 = scmp.ne.s32.totalorder %s38_s18, %s1194_s26  ;;  %p1200_p5 = scmp.lt.s32.totalorder %s1194_s26, %s1194_s26 }
   0xd   :  { %p1201_p6 = por %p1200_p5, %p1199_p4 }
   0xf   :  { %p1202_p7 = pnand %p1201_p6, %p1195_p3 }
  0x11   :  { %1205 = shalt.err (!%p1202_p7)
}
  0x12   :  { %s1325_s27 = smov 128   ;;  %s1326_s28 = smov 8  }
  0x13   :  { %43 = dma.hbm_to_vmem [thread:$0]  %s1710_s1, 2048, %s38_s18, [#allocation6], %s1325_s27, %s1325_s27, %s1326_s28  }
  0x14   :  { %s1327_s12 = smov [#allocation8]   ;;  %s1328_s14 = smov [#allocation2]  }
  0x15   :  { %s69_s13 = sshll.u32 %s1327_s12, 4  ;;  %s25_s15 = sshll.u32 %s1328_s14, 4  ;;  %s70_s13 = int_to_ptr.vmem [resolvable:$true] %s69_s13  ;;  %s26_s15 = int_to_ptr.vmem [resolvable:$true] %s25_s15 }
  0x16   :  { %s1206_s19 = scalar_lea.hbm %s1716_s7, 4096 }
  0x17   :  { %p1207_p8 = scmp.ne.s32.totalorder %s1716_s7, %s1206_s19  ;;  %p1210_p9 = scmp.lt.u32.totalorder %s1206_s19, %s1716_s7 }
  0x19   :  { %p1212_p10 = pnand %p1210_p9, %p1207_p8 }
  0x1b   :  { %1215 = shalt.err (!%p1212_p10)
}
  0x1c   :  { %s1216_s1 = scalar_lea.vmem %s70_s13, 4096  ;;  %p1221_p12 = scmp.lt.s32.totalorder %s70_s13, %s70_s13 }
  0x1d   :  { %p1217_p11 = scmp.ne.s32.totalorder %s70_s13, %s1216_s1  ;;  %p1222_p13 = scmp.lt.s32.totalorder %s1216_s1, %s1216_s1 }
  0x1f   :  { %p1223_p0 = por %p1222_p13, %p1221_p12 }
  0x21   :  { %p1224_p1 = pnand %p1223_p0, %p1217_p11 }
  0x23   :  { %1227 = shalt.err (!%p1224_p1)
}
  0x24   :  { %s1329_s18 = smov 256   ;;  %s1330_s24 = smov 16  }
  0x25   :  { %75 = dma.hbm_to_vmem [thread:$0]  %s1716_s7, 4096, %s70_s13, [#allocation9], %s1329_s18, %s1329_s18, %s1330_s24  }
  0x26   :  { %s1228_s12 = scalar_lea.hbm %s1709_s0, 2048 }
  0x27   :  { %p1229_p2 = scmp.ne.s32.totalorder %s1709_s0, %s1228_s12  ;;  %p1232_p3 = scmp.lt.u32.totalorder %s1228_s12, %s1709_s0 }
  0x29   :  { %p1234_p4 = pnand %p1232_p3, %p1229_p2 }
  0x2b   :  { %1237 = shalt.err (!%p1234_p4)
}
  0x2c   :  { %s1238_s20 = scalar_lea.vmem %s26_s15, 2048  ;;  %p1243_p6 = scmp.lt.s32.totalorder %s26_s15, %s26_s15 }
  0x2d   :  { %p1239_p5 = scmp.ne.s32.totalorder %s26_s15, %s1238_s20  ;;  %p1244_p7 = scmp.lt.s32.totalorder %s1238_s20, %s1238_s20 }
  0x2f   :  { %p1245_p8 = por %p1244_p7, %p1243_p6 }
  0x31   :  { %p1246_p9 = pnand %p1245_p8, %p1239_p5 }
  0x33   :  { %1249 = shalt.err (!%p1246_p9)
}
  0x34   :  { %31 = dma.hbm_to_vmem [thread:$0]  %s1709_s0, 2048, %s26_s15, [#allocation3], %s1325_s27, %s1325_s27, %s1326_s28  }
  0x35   :  { %s1331_s21 = smov [#allocation7]   ;;  %s1332_s23 = smov [#allocation10]  }
  0x36   :  { %s57_s22 = sshll.u32 %s1331_s21, 4  ;;  %s83_s1 = sshll.u32 %s1332_s23, 4  ;;  %s58_s22 = int_to_ptr.vmem [resolvable:$true] %s57_s22  ;;  %s84_s1 = int_to_ptr.vmem [resolvable:$true] %s83_s1 }
  0x37   :  { %s1250_s29 = scalar_lea.hbm %s1715_s6, 4096 }
  0x38   :  { %p1251_p10 = scmp.ne.s32.totalorder %s1715_s6, %s1250_s29  ;;  %p1254_p11 = scmp.lt.u32.totalorder %s1250_s29, %s1715_s6 }
  0x3a   :  { %p1256_p12 = pnand %p1254_p11, %p1251_p10 }
  0x3c   :  { %1259 = shalt.err (!%p1256_p12)
}
  0x3d   :  { %s1260_s0 = scalar_lea.vmem %s58_s22, 4096  ;;  %p1265_p0 = scmp.lt.s32.totalorder %s58_s22, %s58_s22 }
  0x3e   :  { %p1261_p13 = scmp.ne.s32.totalorder %s58_s22, %s1260_s0  ;;  %p1266_p1 = scmp.lt.s32.totalorder %s1260_s0, %s1260_s0 }
  0x40   :  { %p1267_p2 = por %p1266_p1, %p1265_p0 }
  0x42   :  { %p1268_p3 = pnand %p1267_p2, %p1261_p13 }
  0x44   :  { %1271 = shalt.err (!%p1268_p3)
}
  0x45   :  { %63 = dma.hbm_to_vmem [thread:$0]  %s1715_s6, 4096, %s58_s22, [#allocation6], %s1329_s18, %s1329_s18, %s1330_s24  }
  0x46   :  { %s1272_s7 = scalar_lea.hbm %s1718_s9, 4096 }
  0x47   :  { %p1273_p4 = scmp.ne.s32.totalorder %s1718_s9, %s1272_s7  ;;  %p1276_p5 = scmp.lt.u32.totalorder %s1272_s7, %s1718_s9 }
  0x49   :  { %p1278_p6 = pnand %p1276_p5, %p1273_p4 }
  0x4b   :  { %1281 = shalt.err (!%p1278_p6)
}
  0x4c   :  { %s1282_s26 = scalar_lea.vmem %s84_s1, 4096  ;;  %p1287_p8 = scmp.lt.s32.totalorder %s84_s1, %s84_s1 }
  0x4d   :  { %p1283_p7 = scmp.ne.s32.totalorder %s84_s1, %s1282_s26  ;;  %p1288_p9 = scmp.lt.s32.totalorder %s1282_s26, %s1282_s26 }
  0x4f   :  { %p1289_p10 = por %p1288_p9, %p1287_p8 }
  0x51   :  { %p1290_p11 = pnand %p1289_p10, %p1283_p7 }
  0x53   :  { %1293 = shalt.err (!%p1290_p11)
}
  0x54   :  { %89 = dma.hbm_to_vmem [thread:$0]  %s1718_s9, 4096, %s84_s1, [#allocation9], %s1325_s27, %s1325_s27, %s1326_s28  }
  0x55   :  { %1316 = dma.done.wait [#allocation3], 2048  }
  0x56   :  { %1317 = vsyncadd [#allocation3], 4294965248 }
  0x57   :  { %1318 = dma.done.wait [#allocation6], 6144  }
  0x58   :  { %1319 = vsyncadd [#allocation6], 4294961152 }
  0x59   :  { %1320 = dma.done.wait [#allocation9], 8192  }
  0x5a   :  { %1321 = vsyncadd [#allocation9], 4294959104  ;;  %v1333_v0 = vmov 0.0   ;;  %v296_v1 = vld [vmem:[#allocation8 + $0x8] sm:$0xff]  ;;  %v298_v2 = vld [vmem:[#allocation8 + $0x18] sm:$0xff] }
  0x5b   :  { %391 = vmatprep.mubr.f32.mxu0 %v1333_v0  ;;  %439 = vmatprep.mubr.f32.mxu1 %v1333_v0  ;;  %v295_v3 = vld [vmem:[#allocation8] sm:$0xff]  ;;  %v1029_v4 = vpack.c.bf16 %v298_v2, %v296_v1  ;;  %v297_v5 = vld [vmem:[#allocation8 + $0x10] sm:$0xff]  ;;  %v300_v6 = vld [vmem:[#allocation8 + $0x28] sm:$0xff] }
  0x5c   :  { %v302_v7 = vld [vmem:[#allocation8 + $0x38] sm:$0xff]  ;;  %v1031_v8 = vpack.c.bf16 %v297_v5, %v295_v3  ;;  %v299_v10 = vld [vmem:[#allocation8 + $0x20] sm:$0xff]  ;;  %v301_v11 = vld [vmem:[#allocation8 + $0x30] sm:$0xff] }
  0x5d   :  { %v1033_v9 = vpack.c.bf16 %v302_v7, %v300_v6  ;;  %v304_v12 = vld [vmem:[#allocation8 + $0x48] sm:$0xff]  ;;  %1030 = vmatprep.subr.bf16.mxu0 %v1029_v4  ;;  %v306_v13 = vld [vmem:[#allocation8 + $0x58] sm:$0xff]  ;;  %1125 = vmatprep.subr.bf16.mxu1 %v1029_v4  ;;  %v1035_v14 = vpack.c.bf16 %v301_v11, %v299_v10  ;;  %v303_v16 = vld [vmem:[#allocation8 + $0x40] sm:$0xff] }
  0x5e   :  { %1032 = vmatpush1.bf16.msra.mxu0 %v1031_v8  ;;  %1133 = vmatpush1.bf16.msra.mxu1 %v1031_v8  ;;  %v1037_v15 = vpack.c.bf16 %v306_v13, %v304_v12  ;;  %v305_v17 = vld [vmem:[#allocation8 + $0x50] sm:$0xff]  ;;  %v308_v18 = vld [vmem:[#allocation8 + $0x68] sm:$0xff]  ;;  %v310_v19 = vld [vmem:[#allocation8 + $0x78] sm:$0xff] }
  0x5f   :  { %1034 = vmatprep.subr.bf16.mxu0 %v1033_v9  ;;  %1126 = vmatprep.subr.bf16.mxu1 %v1033_v9  ;;  %v1039_v20 = vpack.c.bf16 %v305_v17, %v303_v16  ;;  %v1041_v21 = vpack.c.bf16 %v310_v19, %v308_v18  ;;  %v307_v22 = vld [vmem:[#allocation8 + $0x60] sm:$0xff]  ;;  %v309_v23 = vld [vmem:[#allocation8 + $0x70] sm:$0xff]  ;;  %v312_v24 = vld [vmem:[#allocation8 + $0x88] sm:$0xff] }
  0x60   :  { %v314_v25 = vld [vmem:[#allocation8 + $0x98] sm:$0xff]  ;;  %v1043_v26 = vpack.c.bf16 %v309_v23, %v307_v22  ;;  %v311_v28 = vld [vmem:[#allocation8 + $0x80] sm:$0xff]  ;;  %v313_v29 = vld [vmem:[#allocation8 + $0x90] sm:$0xff] }
  0x61   :  { %v1045_v27 = vpack.c.bf16 %v314_v25, %v312_v24  ;;  %v316_v30 = vld [vmem:[#allocation8 + $0xa8] sm:$0xff]  ;;  %v318_v31 = vld [vmem:[#allocation8 + $0xb8] sm:$0xff]  ;;  %v1047_v32 = vpack.c.bf16 %v313_v29, %v311_v28  ;;  %v315_v34 = vld [vmem:[#allocation8 + $0xa0] sm:$0xff] }
  0x62   :  { %1036 = vmatpush1.bf16.msra.mxu0 %v1035_v14  ;;  %1134 = vmatpush1.bf16.msra.mxu1 %v1035_v14  ;;  %v1049_v33 = vpack.c.bf16 %v318_v31, %v316_v30  ;;  %v317_v35 = vld [vmem:[#allocation8 + $0xb0] sm:$0xff]  ;;  %v320_v36 = vld [vmem:[#allocation8 + $0xc8] sm:$0xff]  ;;  %v322_v37 = vld [vmem:[#allocation8 + $0xd8] sm:$0xff] }
  0x63   :  { %1038 = vmatprep.subr.bf16.mxu0 %v1037_v15  ;;  %1127 = vmatprep.subr.bf16.mxu1 %v1037_v15  ;;  %v1051_v38 = vpack.c.bf16 %v317_v35, %v315_v34  ;;  %v185_v39 = vld [vmem:[#allocation5] sm:$0xff]  ;;  %v1053_v41 = vpack.c.bf16 %v322_v37, %v320_v36  ;;  %v321_v43 = vld [vmem:[#allocation8 + $0xd0] sm:$0xff]  ;;  %v324_v44 = vld [vmem:[#allocation8 + $0xe8] sm:$0xff] }
  0x64   :  { %v1475_v40 = vld [vmem:[%s1713_s4] ss:$0 sm:$0xff]  ;;  %v326_v45 = vld [vmem:[#allocation8 + $0xf8] sm:$0xff]  ;;  %v186_v49 = vld [vmem:[#allocation5 + $0x8] sm:$0xff] }
  0x65   :  { %v319_v42 = vld [vmem:[#allocation8 + $0xc0] sm:$0xff]  ;;  %v208_v46 = vmul.f32 %v1475_v40, %v185_v39  ;;  %v1057_v50 = vpack.c.bf16 %v326_v45, %v324_v44  ;;  %v325_v52 = vld [vmem:[#allocation8 + $0xf0] sm:$0xff]  ;;  %v264_v53 = vld [vmem:[#allocation7 + $0x8] sm:$0xff]  ;;  %v209_v56 = vmul.f32 %v1475_v40, %v186_v49 }
  0x66   :  { %1040 = vmatpush1.bf16.msra.mxu0 %v1039_v20  ;;  %1135 = vmatpush1.bf16.msra.mxu1 %v1039_v20  ;;  %v1055_v47 = vpack.c.bf16 %v321_v43, %v319_v42  ;;  %v1481_v48 = vld [vmem:[%s1714_s5] ss:$0 sm:$0xff]  ;;  %v266_v54 = vld [vmem:[#allocation7 + $0x18] sm:$0xff]  ;;  %v187_v58 = vld [vmem:[#allocation5 + $0x10] sm:$0xff] }
  0x67   :  { %1042 = vmatprep.subr.bf16.mxu0 %v1041_v21  ;;  %1128 = vmatprep.subr.bf16.mxu1 %v1041_v21  ;;  %v323_v51 = vld [vmem:[#allocation8 + $0xe0] sm:$0xff]  ;;  %v231_v55 = vadd.f32 %v1481_v48, %v208_v46  ;;  %v1061_v59 = vpack.c.bf16 %v266_v54, %v264_v53  ;;  %v265_v61 = vld [vmem:[#allocation7 + $0x10] sm:$0xff]  ;;  %v268_v63 = vld [vmem:[#allocation7 + $0x28] sm:$0xff]  ;;  %v232_v4 = vadd.f32 %v1481_v48, %v209_v56 }
  0x68   :  { %v1059_v57 = vpack.c.bf16 %v325_v52, %v323_v51  ;;  %v263_v60 = vld [vmem:[#allocation7] sm:$0xff]  ;;  %v270_v1 = vld [vmem:[#allocation7 + $0x38] sm:$0xff]  ;;  %v194_v2 = vld [vmem:[#allocation5 + $0x48] sm:$0xff]  ;;  %v210_v5 = vmul.f32 %v1475_v40, %v187_v58 }
  0x69   :  { %v193_v62 = vld [vmem:[#allocation5 + $0x40] sm:$0xff]  ;;  %v247_v3 = vmax.f32 %v231_v55, 0.0  ;;  %v195_v6 = vld [vmem:[#allocation5 + $0x50] sm:$0xff]  ;;  %v1063_v7 = vpack.c.bf16 %v265_v61, %v263_v60  ;;  %v188_v8 = vld [vmem:[#allocation5 + $0x18] sm:$0xff]  ;;  %v1065_v10 = vpack.c.bf16 %v270_v1, %v268_v63  ;;  %v217_v13 = vmul.f32 %v1475_v40, %v194_v2 }
  0x6a   :  { %1044 = vmatpush1.bf16.msra.mxu0 %v1043_v26  ;;  %1136 = vmatpush1.bf16.msra.mxu1 %v1043_v26  ;;  %v216_v9 = vmul.f32 %v1475_v40, %v193_v62  ;;  %v267_v11 = vld [vmem:[#allocation7 + $0x20] sm:$0xff]  ;;  %v269_v12 = vld [vmem:[#allocation7 + $0x30] sm:$0xff]  ;;  %v272_v14 = vld [vmem:[#allocation7 + $0x48] sm:$0xff]  ;;  %v218_v17 = vmul.f32 %v1475_v40, %v195_v6  ;;  %v248_v18 = vmax.f32 %v232_v4, 0.0  ;;  %v233_v19 = vadd.f32 %v1481_v48, %v210_v5 }
  0x6b   :  { %1046 = vmatprep.subr.bf16.mxu0 %v1045_v27  ;;  %1129 = vmatprep.subr.bf16.mxu1 %v1045_v27  ;;  %v274_v15 = vld [vmem:[#allocation7 + $0x58] sm:$0xff]  ;;  %v211_v20 = vmul.f32 %v1475_v40, %v188_v8  ;;  %v240_v21 = vadd.f32 %v1481_v48, %v217_v13  ;;  %v1067_v23 = vpack.c.bf16 %v269_v12, %v267_v11  ;;  %v189_v24 = vld [vmem:[#allocation5 + $0x20] sm:$0xff]  ;;  %v273_v28 = vld [vmem:[#allocation7 + $0x50] sm:$0xff] }
  0x6c   :  { %v239_v16 = vadd.f32 %v1481_v48, %v216_v9  ;;  %v196_v22 = vld [vmem:[#allocation5 + $0x58] sm:$0xff]  ;;  %v1069_v26 = vpack.c.bf16 %v274_v15, %v272_v14  ;;  %v271_v27 = vld [vmem:[#allocation7 + $0x40] sm:$0xff]  ;;  %v276_v29 = vld [vmem:[#allocation7 + $0x68] sm:$0xff]  ;;  %v249_v34 = vmax.f32 %v233_v19, 0.0  ;;  %v212_v36 = vmul.f32 %v1475_v40, %v189_v24 }
  0x6d   :  { %v278_v30 = vld [vmem:[#allocation7 + $0x78] sm:$0xff]  ;;  %v256_v31 = vmax.f32 %v240_v21, 0.0  ;;  %v234_v35 = vadd.f32 %v1481_v48, %v211_v20  ;;  %v197_v37 = vld [vmem:[#allocation5 + $0x60] sm:$0xff]  ;;  %v190_v42 = vld [vmem:[#allocation5 + $0x28] sm:$0xff] }
  0x6e   :  { %1048 = vmatpush1.bf16.msra.mxu0 %v1047_v32  ;;  %1137 = vmatpush1.bf16.msra.mxu1 %v1047_v32  ;;  %v255_v25 = vmax.f32 %v239_v16, 0.0  ;;  %v241_v32 = vadd.f32 %v1481_v48, %v218_v17  ;;  %v275_v39 = vld [vmem:[#allocation7 + $0x60] sm:$0xff]  ;;  %v1073_v43 = vpack.c.bf16 %v278_v30, %v276_v29  ;;  %v280_v44 = vld [vmem:[#allocation7 + $0x88] sm:$0xff]  ;;  %v220_v51 = vmul.f32 %v1475_v40, %v197_v37  ;;  %v743_v58 = vld [vmem:[#allocation10 + $0x90] sm:$0xff] }
  0x6f   :  { %1050 = vmatprep.subr.bf16.mxu0 %v1049_v33  ;;  %1130 = vmatprep.subr.bf16.mxu1 %v1049_v33  ;;  %v219_v33 = vmul.f32 %v1475_v40, %v196_v22  ;;  %v741_v45 = vld [vmem:[#allocation10 + $0x80] sm:$0xff]  ;;  %v742_v46 = vld [vmem:[#allocation10 + $0x88] sm:$0xff]  ;;  %v250_v54 = vmax.f32 %v234_v35, 0.0  ;;  %v235_v55 = vadd.f32 %v1481_v48, %v212_v36  ;;  %v213_v56 = vmul.f32 %v1475_v40, %v190_v42  ;;  %v191_v61 = vld [vmem:[#allocation5 + $0x30] sm:$0xff] }
  0x70   :  { %v257_v49 = vmax.f32 %v241_v32, 0.0  ;;  %v725_v52 = vld [vmem:[#allocation10] sm:$0xff]  ;;  %v726_v53 = vld [vmem:[#allocation10 + $0x8] sm:$0xff]  ;;  %v1093_v62 = vpack.c.bf16 %v742_v46, %v741_v45  ;;  %v281_v2 = vld [vmem:[#allocation7 + $0x90] sm:$0xff]  ;;  %v214_v14 = vmul.f32 %v1475_v40, %v191_v61 }
  0x71   :  { %v279_v1 = vld [vmem:[#allocation7 + $0x80] sm:$0xff]  ;;  %v1095_v4 = vpack.c.bf16 %v726_v53, %v725_v52  ;;  %v286_v5 = vld [vmem:[#allocation7 + $0xb8] sm:$0xff]  ;;  %v251_v12 = vmax.f32 %v235_v55, 0.0  ;;  %v236_v13 = vadd.f32 %v1481_v48, %v213_v56  ;;  %v199_v15 = vld [vmem:[#allocation5 + $0x70] sm:$0xff] }
  0x72   :  { %1052 = vmatpush1.bf16.msra.mxu0 %v1051_v38  ;;  %1138 = vmatpush1.bf16.msra.mxu1 %v1051_v38  ;;  %v1071_v38 = vpack.c.bf16 %v273_v28, %v271_v27  ;;  %v728_v11 = vld [vmem:[#allocation10 + $0x18] sm:$0xff]  ;;  %v745_v16 = vld [vmem:[#allocation10 + $0xa0] sm:$0xff]  ;;  %v746_v17 = vld [vmem:[#allocation10 + $0xa8] sm:$0xff]  ;;  %v222_v28 = vmul.f32 %v1475_v40, %v199_v15 }
  0x73   :  { %1054 = vmatprep.subr.bf16.mxu0 %v1053_v41  ;;  %1131 = vmatprep.subr.bf16.mxu1 %v1053_v41  ;;  %v277_v41 = vld [vmem:[#allocation7 + $0x70] sm:$0xff]  ;;  %v192_v19 = vld [vmem:[#allocation5 + $0x38] sm:$0xff]  ;;  %v283_v21 = vld [vmem:[#allocation7 + $0xa0] sm:$0xff]  ;;  %v1101_v29 = vpack.c.bf16 %v746_v17, %v745_v16  ;;  %v252_v32 = vmax.f32 %v236_v13, 0.0 }
  0x74   :  { %v1075_v60 = vpack.c.bf16 %v277_v41, %v275_v39  ;;  %v285_v22 = vld [vmem:[#allocation7 + $0xb0] sm:$0xff]  ;;  %v729_v30 = vld [vmem:[#allocation10 + $0x20] sm:$0xff]  ;;  %v200_v35 = vld [vmem:[#allocation5 + $0x78] sm:$0xff] }
  0x75   :  { %v747_v36 = vld [vmem:[#allocation10 + $0xb0] sm:$0xff]  ;;  %v748_v37 = vld [vmem:[#allocation10 + $0xb8] sm:$0xff]  ;;  %v107_v39 = vld [vmem:[#allocation2] sm:$0xff] }
  0x76   :  { %1056 = vmatpush1.bf16.msra.mxu0 %v1055_v47  ;;  %1139 = vmatpush1.bf16.msra.mxu1 %v1055_v47  ;;  %v282_v47 = vld [vmem:[#allocation7 + $0x98] sm:$0xff]  ;;  %v1522_v41 = vld [vmem:[%s1711_s2] ss:$0 sm:$0xff]  ;;  %v292_v45 = vld [vmem:[#allocation7 + $0xe8] sm:$0xff]  ;;  %v1105_v52 = vpack.c.bf16 %v748_v37, %v747_v36 }
  0x77   :  { %1058 = vmatprep.subr.bf16.mxu0 %v1057_v50  ;;  %1132 = vmatprep.subr.bf16.mxu1 %v1057_v50  ;;  %v242_v50 = vadd.f32 %v1481_v48, %v219_v33  ;;  %v1077_v63 = vpack.c.bf16 %v282_v47, %v280_v44  ;;  %v237_v33 = vadd.f32 %v1481_v48, %v214_v14  ;;  %v289_v44 = vld [vmem:[#allocation7 + $0xd0] sm:$0xff]  ;;  %v294_v47 = vld [vmem:[#allocation7 + $0xf8] sm:$0xff]  ;;  %v108_v61 = vld [vmem:[#allocation2 + $0x8] sm:$0xff] }
  0x78   :  { %v731_v53 = vld [vmem:[#allocation10 + $0x30] sm:$0xff] }
  0x79   :  { %v258_v6 = vmax.f32 %v242_v50, 0.0  ;;  %v245_v50 = vadd.f32 %v1481_v48, %v222_v28  ;;  %v253_v55 = vmax.f32 %v237_v33, 0.0  ;;  %v109_v14 = vld [vmem:[#allocation2 + $0x10] sm:$0xff] }
  0x7a   :  { %1060 = vmatpush1.bf16.msra.mxu0 %v1059_v57  ;;  %1140 = vmatpush1.bf16.msra.mxu1 %v1059_v57  ;;  %v198_v57 = vld [vmem:[#allocation5 + $0x68] sm:$0xff]  ;;  %v735_v17 = vld [vmem:[#allocation10 + $0x50] sm:$0xff] }
  0x7b   :  { %1062 = vmatprep.subr.bf16.mxu0 %v1061_v59  ;;  %v744_v59 = vld [vmem:[#allocation10 + $0x98] sm:$0xff]  ;;  %v221_v8 = vmul.f32 %v1475_v40, %v198_v57  ;;  %1094 = vmatprep.subr.bf16.mxu1 %v1093_v62  ;;  %v130_v57 = vmul.f32 %v1522_v41, %v107_v39  ;;  %v1089_v62 = vpack.c.bf16 %v294_v47, %v292_v45 }
  0x7c   :  { %v1097_v9 = vpack.c.bf16 %v744_v59, %v743_v58  ;;  %v749_v58 = vld [vmem:[#allocation10 + $0xc0] sm:$0xff]  ;;  %v750_v59 = vld [vmem:[#allocation10 + $0xc8] sm:$0xff] }
  0x7d   :  { %392 = vmatmul.mubr.f32.vlgmr.msra.gmra.mrb[0].mxu0 %v247_v3  ;;  %440 = vmatmul.mubr.f32.vlgmr.msra.gmra.mrb[0].mxu1 %v255_v25  ;;  %v284_v3 = vld [vmem:[#allocation7 + $0xa8] sm:$0xff]  ;;  %v290_v25 = vld [vmem:[#allocation7 + $0xd8] sm:$0xff]  ;;  %v244_v27 = vadd.f32 %v1481_v48, %v221_v8 }
  0x7e   :  { %1064 = vmatpush1.bf16.msra.mxu0 %v1063_v7  ;;  %397 = vmatprep.mubr.f32.mxu0 %v1333_v0  ;;  %v243_v7 = vadd.f32 %v1481_v48, %v220_v51  ;;  %v1081_v20 = vpack.c.bf16 %v286_v5, %v284_v3  ;;  %v223_v51 = vmul.f32 %v1475_v40, %v200_v35  ;;  %v261_v3 = vmax.f32 %v245_v50, 0.0 }
  0x7f   :  { %1066 = vmatprep.subr.bf16.mxu0 %v1065_v10  ;;  %445 = vmatprep.mubr.f32.mxu1 %v1333_v0  ;;  %v727_v10 = vld [vmem:[#allocation10 + $0x10] sm:$0xff]  ;;  %v1109_v5 = vpack.c.bf16 %v750_v59, %v749_v58 }
  0x80   :  { %1096 = vmatpush3.bf16.msra.mxu1 %v1095_v4  ;;  %v1099_v24 = vpack.c.bf16 %v728_v11, %v727_v10  ;;  %v246_v4 = vadd.f32 %v1481_v48, %v223_v51  ;;  %v131_v10 = vmul.f32 %v1522_v41, %v108_v61  ;;  %v751_v11 = vld [vmem:[#allocation10 + $0xd0] sm:$0xff]  ;;  %v118_v61 = vld [vmem:[#allocation2 + $0x58] sm:$0xff] }
  0x81   :  { %398 = vmatmul.mubr.f32.gmra.mrb[2].mxu0 %v248_v18  ;;  %446 = vmatmul.mubr.f32.gmra.mrb[2].mxu1 %v256_v31  ;;  %v1079_v18 = vpack.c.bf16 %v281_v2, %v279_v1  ;;  %v730_v31 = vld [vmem:[#allocation10 + $0x28] sm:$0xff]  ;;  %v293_v1 = vld [vmem:[#allocation7 + $0xf0] sm:$0xff] }
  0x82   :  { %1068 = vmatpush1.bf16.msra.mxu0 %v1067_v23  ;;  %403 = vmatprep.mubr.f32.mxu0 %v1333_v0  ;;  %v288_v23 = vld [vmem:[#allocation7 + $0xc8] sm:$0xff]  ;;  %v1103_v46 = vpack.c.bf16 %v730_v31, %v729_v30  ;;  %v262_v15 = vmax.f32 %v246_v4, 0.0  ;;  %v111_v30 = vld [vmem:[#allocation2 + $0x20] sm:$0xff] }
  0x83   :  { %1070 = vmatprep.subr.bf16.mxu0 %v1069_v26  ;;  %451 = vmatprep.mubr.f32.mxu1 %v1333_v0  ;;  %v259_v26 = vmax.f32 %v243_v7, 0.0  ;;  %v1085_v42 = vpack.c.bf16 %v290_v25, %v288_v23  ;;  %v734_v7 = vld [vmem:[#allocation10 + $0x48] sm:$0xff]  ;;  %v134_v33 = vmul.f32 %v1522_v41, %v111_v30 }
  0x84   :  { %1098 = vmatprep.subr.bf16.mxu1 %v1097_v9  ;;  %v754_v23 = vld [vmem:[#allocation10 + $0xe8] sm:$0xff] }
  0x85   :  { %404 = vmatmul.mubr.f32.gmra.mrb[4].mxu0 %v249_v34  ;;  %452 = vmatmul.mubr.f32.gmra.mrb[4].mxu1 %v257_v49  ;;  %v215_v34 = vmul.f32 %v1475_v40, %v192_v19  ;;  %v260_v49 = vmax.f32 %v244_v27, 0.0  ;;  %v1533_v40 = vld [vmem:[%s1712_s3] ss:$0 sm:$0xff] }
  0x86   :  { %1072 = vmatpush1.bf16.msra.mxu0 %v1071_v38  ;;  %409 = vmatprep.mubr.f32.mxu0 %v1333_v0  ;;  %v1083_v38 = vpack.c.bf16 %v285_v22, %v283_v21  ;;  %v153_v9 = vadd.f32 %v1533_v40, %v130_v57  ;;  %v132_v21 = vmul.f32 %v1522_v41, %v109_v14  ;;  %v753_v22 = vld [vmem:[#allocation10 + $0xe0] sm:$0xff]  ;;  %v117_v57 = vld [vmem:[#allocation2 + $0x50] sm:$0xff]  ;;  %v122_v14 = vld [vmem:[#allocation2 + $0x78] sm:$0xff] }
  0x87   :  { %1074 = vmatprep.subr.bf16.mxu0 %v1073_v43  ;;  %457 = vmatprep.mubr.f32.mxu1 %v1333_v0  ;;  %v287_v43 = vld [vmem:[#allocation7 + $0xc0] sm:$0xff]  ;;  %v238_v56 = vadd.f32 %v1481_v48, %v215_v34  ;;  %v112_v34 = vld [vmem:[#allocation2 + $0x28] sm:$0xff]  ;;  %v157_v36 = vadd.f32 %v1533_v40, %v134_v33 }
  0x88   :  { %1100 = vmatpush3.bf16.msra.mxu1 %v1099_v24  ;;  %v169_v19 = vmax.f32 %v153_v9, 0.0  ;;  %v110_v24 = vld [vmem:[#allocation2 + $0x18] sm:$0xff]  ;;  %v155_v28 = vadd.f32 %v1533_v40, %v132_v21  ;;  %v135_v37 = vmul.f32 %v1522_v41, %v112_v34  ;;  %v738_v21 = vld [vmem:[#allocation10 + $0x68] sm:$0xff]  ;;  %v651_v34 = vlaneseq }
  0x89   :  { %410 = vmatmul.mubr.f32.gmra.mrb[6].mxu0 %v250_v54  ;;  %458 = vmatmul.mubr.f32.gmra.mrb[6].mxu1 %v258_v6  ;;  %v732_v54 = vld [vmem:[#allocation10 + $0x38] sm:$0xff]  ;;  %v733_v6 = vld [vmem:[#allocation10 + $0x40] sm:$0xff]  ;;  %v254_v8 = vmax.f32 %v238_v56, 0.0  ;;  %v173_v39 = vmax.f32 %v157_v36, 0.0 }
  0x8a   :  { %1076 = vmatpush1.bf16.msra.mxu0 %v1075_v60  ;;  %415 = vmatprep.mubr.f32.mxu0 %v1333_v0  ;;  %v1087_v60 = vpack.c.bf16 %v289_v44, %v287_v43  ;;  %v1107_v2 = vpack.c.bf16 %v732_v54, %v731_v53  ;;  %v1111_v48 = vpack.c.bf16 %v734_v7, %v733_v6  ;;  %v171_v31 = vmax.f32 %v155_v28, 0.0  ;;  %v114_v44 = vld [vmem:[#allocation2 + $0x38] sm:$0xff]  ;;  %v116_v53 = vld [vmem:[#allocation2 + $0x48] sm:$0xff] }
  0x8b   :  { %1078 = vmatprep.subr.bf16.mxu0 %v1077_v63  ;;  %463 = vmatprep.mubr.f32.mxu1 %v1333_v0  ;;  %v291_v63 = vld [vmem:[#allocation7 + $0xe0] sm:$0xff]  ;;  %v137_v47 = vmul.f32 %v1522_v41, %v114_v44  ;;  %v139_v56 = vmul.f32 %v1522_v41, %v116_v53  ;;  %v120_v6 = vld [vmem:[#allocation2 + $0x68] sm:$0xff] }
  0x8c   :  { %1102 = vmatprep.subr.bf16.mxu1 %v1101_v29  ;;  %v1091_v13 = vpack.c.bf16 %v293_v1, %v291_v63  ;;  %v133_v29 = vmul.f32 %v1522_v41, %v110_v24  ;;  %v141_v1 = vmul.f32 %v1522_v41, %v118_v61  ;;  %v143_v9 = vmul.f32 %v1522_v41, %v120_v6  ;;  %v756_v24 = vld [vmem:[#allocation10 + $0xf8] sm:$0xff] }
  0x8d   :  { %416 = vmatmul.mubr.f32.gmra.mrb[8].mxu0 %v251_v12  ;;  %464 = vmatmul.mubr.f32.gmra.mrb[8].mxu1 %v259_v26  ;;  %v752_v12 = vld [vmem:[#allocation10 + $0xd8] sm:$0xff]  ;;  %v1117_v26 = vpack.c.bf16 %v754_v23, %v753_v22  ;;  %v160_v51 = vadd.f32 %v1533_v40, %v137_v47  ;;  %v162_v59 = vadd.f32 %v1533_v40, %v139_v56  ;;  %v755_v23 = vld [vmem:[#allocation10 + $0xf0] sm:$0xff] }
  0x8e   :  { %1080 = vmatpush1.bf16.msra.mxu0 %v1079_v18  ;;  %421 = vmatprep.mubr.f32.mxu0 %v1333_v0  ;;  %v1113_v16 = vpack.c.bf16 %v752_v12, %v751_v11  ;;  %v736_v18 = vld [vmem:[#allocation10 + $0x58] sm:$0xff]  ;;  %v164_v4 = vadd.f32 %v1533_v40, %v141_v1  ;;  %v166_v12 = vadd.f32 %v1533_v40, %v143_v9 }
  0x8f   :  { %1082 = vmatprep.subr.bf16.mxu0 %v1081_v20  ;;  %469 = vmatprep.mubr.f32.mxu1 %v1333_v0  ;;  %v154_v20 = vadd.f32 %v1533_v40, %v131_v10  ;;  %v1115_v25 = vpack.c.bf16 %v736_v18, %v735_v17  ;;  %v176_v54 = vmax.f32 %v160_v51, 0.0  ;;  %v121_v10 = vld [vmem:[#allocation2 + $0x70] sm:$0xff] }
  0x90   :  { %1104 = vmatpush3.bf16.msra.mxu1 %v1103_v46  ;;  %v180_v7 = vmax.f32 %v164_v4, 0.0 }
  0x91   :  { %422 = vmatmul.mubr.f32.gmra.mrb[10].mxu0 %v252_v32  ;;  %470 = vmatmul.mubr.f32.gmra.mrb[10].mxu1 %v260_v49  ;;  %v170_v27 = vmax.f32 %v154_v20, 0.0  ;;  %v156_v32 = vadd.f32 %v1533_v40, %v133_v29  ;;  %v115_v49 = vld [vmem:[#allocation2 + $0x40] sm:$0xff] }
  0x92   :  { %1084 = vmatpush1.bf16.msra.mxu0 %v1083_v38  ;;  %427 = vmatprep.mubr.f32.mxu0 %v1333_v0  ;;  %v113_v38 = vld [vmem:[#allocation2 + $0x30] sm:$0xff]  ;;  %v737_v20 = vld [vmem:[#allocation10 + $0x60] sm:$0xff] }
  0x93   :  { %1086 = vmatprep.subr.bf16.mxu0 %v1085_v42  ;;  %1106 = vmatprep.subr.bf16.mxu1 %v1105_v52  ;;  %v172_v35 = vmax.f32 %v156_v32, 0.0  ;;  %v158_v42 = vadd.f32 %v1533_v40, %v135_v37  ;;  %v136_v43 = vmul.f32 %v1522_v41, %v113_v38  ;;  %v138_v52 = vmul.f32 %v1522_v41, %v115_v49 }
  0x94   :  { %475 = vmatprep.mubr.f32.mxu1 %v1333_v0  ;;  %1108 = vmatpush3.bf16.msra.mxu1 %v1107_v2  ;;  %v119_v2 = vld [vmem:[#allocation2 + $0x60] sm:$0xff]  ;;  %v1119_v22 = vpack.c.bf16 %v738_v21, %v737_v20  ;;  %v652_v37 = vshrl.u32 %v651_v34, 7 }
  0x95   :  { %428 = vmatmul.mubr.f32.gmra.mrb[12].mxu0 %v253_v55  ;;  %476 = vmatmul.mubr.f32.gmra.mrb[12].mxu1 %v261_v3  ;;  %v174_v45 = vmax.f32 %v158_v42, 0.0  ;;  %v159_v46 = vadd.f32 %v1533_v40, %v136_v43  ;;  %v161_v55 = vadd.f32 %v1533_v40, %v138_v52  ;;  %v649_v43 = vld [vmem:[%s1717_s8] sm:$0x3] }
  0x96   :  { %1088 = vmatpush1.bf16.msra.mxu0 %v1087_v60  ;;  %433 = vmatprep.mubr.f32.mxu0 %v1333_v0  ;;  %v140_v60 = vmul.f32 %v1522_v41, %v117_v57  ;;  %v653_v42 = vsub.s32 0, %v652_v37  ;;  %v657_v44 = vsub.s32 1, %v652_v37 }
  0x97   :  { %1090 = vmatprep.subr.bf16.mxu0 %v1089_v62  ;;  %1110 = vmatprep.subr.bf16.mxu1 %v1109_v5  ;;  %v175_v50 = vmax.f32 %v159_v46, 0.0  ;;  %v177_v58 = vmax.f32 %v161_v55, 0.0  ;;  %v178_v62 = vmax.f32 %v162_v59, 0.0  ;;  %v142_v5 = vmul.f32 %v1522_v41, %v119_v2 }
  0x98   :  { %481 = vmatprep.mubr.f32.mxu1 %v1333_v0  ;;  %1112 = vmatpush3.bf16.msra.mxu1 %v1111_v48  ;;  %v163_v63 = vadd.f32 %v1533_v40, %v140_v60  ;;  %v182_v48 = vmax.f32 %v166_v12, 0.0  ;;  %v1617_v47 = vrot.slane %v649_v43, %v653_v42  ;;  %v1619_v49 = vrot.slane %v649_v43, %v657_v44 }
  0x99   :  { %434 = vmatmul.mubr.f32.gmra.mrb[14].mxu0 %v254_v8  ;;  %482 = vmatmul.mubr.f32.gmra.mrb[14].mxu1 %v262_v15  ;;  %v165_v8 = vadd.f32 %v1533_v40, %v142_v5 }
  0x9a   :  { %1092 = vmatpush1.bf16.msra.mxu0 %v1091_v13  ;;  %552 = vmatprep.mubr.f32.mxu0 %v1333_v0  ;;  %v179_v3 = vmax.f32 %v163_v63, 0.0  ;;  %v144_v13 = vmul.f32 %v1522_v41, %v121_v10 }
  0x9b   :  { %1114 = vmatprep.subr.bf16.mxu1 %v1113_v16  ;;  %v181_v11 = vmax.f32 %v165_v8, 0.0  ;;  %v145_v16 = vmul.f32 %v1522_v41, %v122_v14  ;;  %v1121_v41 = vpack.c.bf16 %v756_v24, %v755_v23 }
  0x9c   :  { %1116 = vmatpush3.bf16.msra.mxu1 %v1115_v25  ;;  %v167_v15 = vadd.f32 %v1533_v40, %v144_v13  ;;  %v739_v25 = vld [vmem:[#allocation10 + $0x70] sm:$0xff] }
  0x9d   :  { %553 = vmatmul.mubr.f32.vlgmr.msra.gmra.mrb[0].mxu0 %v169_v19  ;;  %1118 = vmatprep.subr.bf16.mxu1 %v1117_v26  ;;  %v168_v18 = vadd.f32 %v1533_v40, %v145_v16  ;;  %v740_v26 = vld [vmem:[#allocation10 + $0x78] sm:$0xff] }
  0x9e   :  { %558 = vmatprep.mubr.f32.mxu0 %v1333_v0  ;;  %v183_v17 = vmax.f32 %v167_v15, 0.0 }
  0x9f   :  { %v184_v19 = vmax.f32 %v168_v18, 0.0 }
  0xa0   :  { %1120 = vmatpush3.bf16.msra.mxu1 %v1119_v22 }
  0xa1   :  { %559 = vmatmul.mubr.f32.gmra.mrb[2].mxu0 %v170_v27  ;;  %v1123_v27 = vpack.c.bf16 %v740_v26, %v739_v25  ;;  %1122 = vmatprep.subr.bf16.mxu1 %v1121_v41 }
  0xa2   :  { %564 = vmatprep.mubr.f32.mxu0 %v1333_v0 }
  0xa4   :  { %1124 = vmatpush3.bf16.msra.mxu1 %v1123_v27 }
  0xa5   :  { %565 = vmatmul.mubr.f32.gmra.mrb[4].mxu0 %v171_v31 }
  0xa6   :  { %570 = vmatprep.mubr.f32.mxu0 %v1333_v0 }
  0xa9   :  { %571 = vmatmul.mubr.f32.gmra.mrb[6].mxu0 %v172_v35 }
  0xaa   :  { %576 = vmatprep.mubr.f32.mxu0 %v1333_v0 }
  0xad   :  { %577 = vmatmul.mubr.f32.gmra.mrb[8].mxu0 %v173_v39 }
  0xae   :  { %582 = vmatprep.mubr.f32.mxu0 %v1333_v0 }
  0xb1   :  { %583 = vmatmul.mubr.f32.gmra.mrb[10].mxu0 %v174_v45 }
  0xb2   :  { %588 = vmatprep.mubr.f32.mxu0 %v1333_v0 }
  0xb5   :  { %589 = vmatmul.mubr.f32.gmra.mrb[12].mxu0 %v175_v50 }
  0xb6   :  { %594 = vmatprep.mubr.f32.mxu0 %v1333_v0 }
  0xb9   :  { %595 = vmatmul.mubr.f32.gmra.mrb[14].mxu0 %v176_v54 }
  0xba   :  { %600 = vmatprep.mubr.f32.mxu0 %v1333_v0 }
  0xbd   :  { %601 = vmatmul.mubr.f32.gmra.mrb[16].mxu0 %v177_v58 }
  0xbe   :  { %606 = vmatprep.mubr.f32.mxu0 %v1333_v0 }
  0xc1   :  { %607 = vmatmul.mubr.f32.gmra.mrb[18].mxu0 %v178_v62 }
  0xc2   :  { %612 = vmatprep.mubr.f32.mxu0 %v1333_v0 }
  0xc5   :  { %613 = vmatmul.mubr.f32.gmra.mrb[20].mxu0 %v179_v3 }
  0xc6   :  { %618 = vmatprep.mubr.f32.mxu0 %v1333_v0 }
  0xc9   :  { %619 = vmatmul.mubr.f32.gmra.mrb[22].mxu0 %v180_v7 }
  0xca   :  { %624 = vmatprep.mubr.f32.mxu0 %v1333_v0 }
  0xcd   :  { %625 = vmatmul.mubr.f32.gmra.mrb[24].mxu0 %v181_v11 }
  0xce   :  { %630 = vmatprep.mubr.f32.mxu0 %v1333_v0 }
  0xd1   :  { %631 = vmatmul.mubr.f32.gmra.mrb[26].mxu0 %v182_v48 }
  0xd2   :  { %636 = vmatprep.mubr.f32.mxu0 %v1333_v0 }
  0xd5   :  { %637 = vmatmul.mubr.f32.gmra.mrb[28].mxu0 %v183_v17 }
  0xd6   :  { %642 = vmatprep.mubr.f32.mxu0 %v1333_v0 }
  0xd9   :  { %643 = vmatmul.mubr.f32.gmra.mrb[30].mxu0 %v184_v19 }
 0x150   :  { %v1586_v40 = vpop.f32.mrb[0].mxu1 }
 0x151   :  { %v1588_v28 = vpop.f32.mrb[1].mxu1 }
 0x154   :  { %v1590_v29 = vpop.f32.mrb[2].mxu1 }
 0x155   :  { %v1592_v0 = vpop.f32.mrb[3].mxu1 }
 0x158   :  { %v1594_v30 = vpop.f32.mrb[4].mxu1 }
 0x159   :  { %v1596_v31 = vpop.f32.mrb[5].mxu1 }
 0x15c   :  { %v1598_v32 = vpop.f32.mrb[6].mxu1 }
 0x15d   :  { %v1600_v33 = vpop.f32.mrb[7].mxu1 }
 0x160   :  { %v1602_v35 = vpop.f32.mrb[8].mxu1 }
 0x161   :  { %v1604_v36 = vpop.f32.mrb[9].mxu1 }
 0x164   :  { %v1606_v38 = vpop.f32.mrb[10].mxu1 }
 0x165   :  { %v1608_v39 = vpop.f32.mrb[11].mxu1 }
 0x168   :  { %v1613_v45 = vpop.f32.mrb[12].mxu1 }
 0x169   :  { %v1615_v46 = vpop.f32.mrb[13].mxu1 }
 0x16c   :  { %v1621_v50 = vpop.f32.mrb[14].mxu1 }
 0x16d   :  { %v1623_v52 = vpop.f32.mrb[15].mxu1 }
 0x170   :  { %v554_v51 = vpop.f32.mrb[0].mxu0 }
 0x171   :  { %v661_v53 = vadd.f32 %v1617_v47, %v554_v51  ;;  %v556_v54 = vpop.f32.mrb[1].mxu0 }
 0x172   :  { %v662_v55 = vadd.f32 %v1619_v49, %v556_v54 }
 0x173   :  { %v693_v58 = vmax.f32 %v661_v53, 0.0 }
 0x174   :  { %v694_v56 = vmax.f32 %v662_v55, 0.0  ;;  %v560_v57 = vpop.f32.mrb[2].mxu0 }
 0x175   :  { %v663_v59 = vadd.f32 %v1617_v47, %v560_v57  ;;  %v562_v60 = vpop.f32.mrb[3].mxu0 }
 0x176   :  { %v664_v61 = vadd.f32 %v1619_v49, %v562_v60  ;;  %828 = vmatprep.mubr.f32.mxu1 %v694_v56 }
 0x177   :  { %829 = vmatmul.mubr.f32.vlgmr.msra.gmra.mrb[16].mxu1 %v693_v58  ;;  %v695_v1 = vmax.f32 %v663_v59, 0.0 }
 0x178   :  { %v696_v62 = vmax.f32 %v664_v61, 0.0  ;;  %v566_v63 = vpop.f32.mrb[4].mxu0 }
 0x179   :  { %v665_v2 = vadd.f32 %v1617_v47, %v566_v63  ;;  %v568_v3 = vpop.f32.mrb[5].mxu0 }
 0x17a   :  { %v666_v4 = vadd.f32 %v1619_v49, %v568_v3  ;;  %833 = vmatprep.mubr.f32.mxu1 %v696_v62 }
 0x17b   :  { %834 = vmatmul.mubr.f32.gmra.mrb[18].mxu1 %v695_v1  ;;  %v697_v7 = vmax.f32 %v665_v2, 0.0 }
 0x17c   :  { %v698_v5 = vmax.f32 %v666_v4, 0.0  ;;  %v572_v6 = vpop.f32.mrb[6].mxu0 }
 0x17d   :  { %v667_v8 = vadd.f32 %v1617_v47, %v572_v6  ;;  %v574_v9 = vpop.f32.mrb[7].mxu0 }
 0x17e   :  { %v668_v10 = vadd.f32 %v1619_v49, %v574_v9  ;;  %838 = vmatprep.mubr.f32.mxu1 %v698_v5 }
 0x17f   :  { %839 = vmatmul.mubr.f32.gmra.mrb[20].mxu1 %v697_v7  ;;  %v699_v13 = vmax.f32 %v667_v8, 0.0 }
 0x180   :  { %v700_v11 = vmax.f32 %v668_v10, 0.0  ;;  %v578_v12 = vpop.f32.mrb[8].mxu0 }
 0x181   :  { %v669_v14 = vadd.f32 %v1617_v47, %v578_v12  ;;  %v580_v48 = vpop.f32.mrb[9].mxu0 }
 0x182   :  { %v670_v15 = vadd.f32 %v1619_v49, %v580_v48  ;;  %843 = vmatprep.mubr.f32.mxu1 %v700_v11 }
 0x183   :  { %844 = vmatmul.mubr.f32.gmra.mrb[22].mxu1 %v699_v13  ;;  %v701_v18 = vmax.f32 %v669_v14, 0.0 }
 0x184   :  { %v702_v16 = vmax.f32 %v670_v15, 0.0  ;;  %v584_v17 = vpop.f32.mrb[10].mxu0 }
 0x185   :  { %v671_v19 = vadd.f32 %v1617_v47, %v584_v17  ;;  %v586_v20 = vpop.f32.mrb[11].mxu0 }
 0x186   :  { %v672_v21 = vadd.f32 %v1619_v49, %v586_v20  ;;  %848 = vmatprep.mubr.f32.mxu1 %v702_v16 }
 0x187   :  { %849 = vmatmul.mubr.f32.gmra.mrb[24].mxu1 %v701_v18  ;;  %v703_v24 = vmax.f32 %v671_v19, 0.0 }
 0x188   :  { %v704_v22 = vmax.f32 %v672_v21, 0.0  ;;  %v590_v23 = vpop.f32.mrb[12].mxu0 }
 0x189   :  { %v673_v41 = vadd.f32 %v1617_v47, %v590_v23  ;;  %v592_v25 = vpop.f32.mrb[13].mxu0 }
 0x18a   :  { %v674_v26 = vadd.f32 %v1619_v49, %v592_v25  ;;  %853 = vmatprep.mubr.f32.mxu1 %v704_v22 }
 0x18b   :  { %854 = vmatmul.mubr.f32.gmra.mrb[26].mxu1 %v703_v24  ;;  %v705_v37 = vmax.f32 %v673_v41, 0.0 }
 0x18c   :  { %v706_v27 = vmax.f32 %v674_v26, 0.0  ;;  %v596_v34 = vpop.f32.mrb[14].mxu0 }
 0x18d   :  { %v675_v42 = vadd.f32 %v1617_v47, %v596_v34  ;;  %v598_v43 = vpop.f32.mrb[15].mxu0 }
 0x18e   :  { %v676_v44 = vadd.f32 %v1619_v49, %v598_v43  ;;  %858 = vmatprep.mubr.f32.mxu1 %v706_v27 }
 0x18f   :  { %859 = vmatmul.mubr.f32.gmra.mrb[28].mxu1 %v705_v37  ;;  %v707_v54 = vmax.f32 %v675_v42, 0.0 }
 0x190   :  { %v708_v51 = vmax.f32 %v676_v44, 0.0  ;;  %v602_v53 = vpop.f32.mrb[16].mxu0 }
 0x191   :  { %v603_v55 = vadd.f32 %v602_v53, %v1586_v40  ;;  %v604_v56 = vpop.f32.mrb[17].mxu0 }
 0x192   :  { %v605_v57 = vadd.f32 %v604_v56, %v1588_v28  ;;  %863 = vmatprep.mubr.f32.mxu1 %v708_v51 }
 0x193   :  { %v677_v58 = vadd.f32 %v1617_v47, %v603_v55  ;;  %864 = vmatmul.mubr.f32.gmra.mrb[30].mxu1 %v707_v54 }
 0x194   :  { %v678_v59 = vadd.f32 %v1619_v49, %v605_v57  ;;  %v608_v60 = vpop.f32.mrb[18].mxu0 }
 0x195   :  { %v609_v61 = vadd.f32 %v608_v60, %v1590_v29  ;;  %v610_v62 = vpop.f32.mrb[19].mxu0  ;;  %v709_v2 = vmax.f32 %v677_v58, 0.0 }
 0x196   :  { %v710_v63 = vmax.f32 %v678_v59, 0.0  ;;  %v611_v1 = vadd.f32 %v610_v62, %v1592_v0 }
 0x197   :  { %v679_v3 = vadd.f32 %v1617_v47, %v609_v61 }
 0x198   :  { %v680_v40 = vadd.f32 %v1619_v49, %v611_v1  ;;  %v614_v4 = vpop.f32.mrb[20].mxu0  ;;  %868 = vmatprep.mubr.f32.mxu1 %v710_v63 }
 0x199   :  { %v615_v28 = vadd.f32 %v614_v4, %v1594_v30  ;;  %v616_v5 = vpop.f32.mrb[21].mxu0  ;;  %869 = vmatmul.mubr.f32.gmra.mrb[32].mxu1 %v709_v2  ;;  %v711_v8 = vmax.f32 %v679_v3, 0.0 }
 0x19a   :  { %v712_v6 = vmax.f32 %v680_v40, 0.0  ;;  %v617_v7 = vadd.f32 %v616_v5, %v1596_v31 }
 0x19b   :  { %v681_v29 = vadd.f32 %v1617_v47, %v615_v28 }
 0x19c   :  { %v682_v9 = vadd.f32 %v1619_v49, %v617_v7  ;;  %v620_v0 = vpop.f32.mrb[22].mxu0  ;;  %873 = vmatprep.mubr.f32.mxu1 %v712_v6 }
 0x19d   :  { %v621_v10 = vadd.f32 %v620_v0, %v1598_v32  ;;  %v622_v11 = vpop.f32.mrb[23].mxu0  ;;  %874 = vmatmul.mubr.f32.gmra.mrb[34].mxu1 %v711_v8  ;;  %v713_v30 = vmax.f32 %v681_v29, 0.0 }
 0x19e   :  { %v714_v12 = vmax.f32 %v682_v9, 0.0  ;;  %v623_v13 = vadd.f32 %v622_v11, %v1600_v33 }
 0x19f   :  { %v683_v14 = vadd.f32 %v1617_v47, %v621_v10 }
 0x1a0   :  { %v684_v48 = vadd.f32 %v1619_v49, %v623_v13  ;;  %v626_v31 = vpop.f32.mrb[24].mxu0  ;;  %878 = vmatprep.mubr.f32.mxu1 %v714_v12 }
 0x1a1   :  { %v627_v15 = vadd.f32 %v626_v31, %v1602_v35  ;;  %v628_v16 = vpop.f32.mrb[25].mxu0  ;;  %879 = vmatmul.mubr.f32.gmra.mrb[36].mxu1 %v713_v30  ;;  %v715_v32 = vmax.f32 %v683_v14, 0.0 }
 0x1a2   :  { %v716_v17 = vmax.f32 %v684_v48, 0.0  ;;  %v629_v18 = vadd.f32 %v628_v16, %v1604_v36 }
 0x1a3   :  { %v685_v19 = vadd.f32 %v1617_v47, %v627_v15 }
 0x1a4   :  { %v686_v20 = vadd.f32 %v1619_v49, %v629_v18  ;;  %v632_v33 = vpop.f32.mrb[26].mxu0  ;;  %883 = vmatprep.mubr.f32.mxu1 %v716_v17 }
 0x1a5   :  { %v633_v21 = vadd.f32 %v632_v33, %v1606_v38  ;;  %v634_v22 = vpop.f32.mrb[27].mxu0  ;;  %884 = vmatmul.mubr.f32.gmra.mrb[38].mxu1 %v715_v32  ;;  %v717_v35 = vmax.f32 %v685_v19, 0.0 }
 0x1a6   :  { %v718_v23 = vmax.f32 %v686_v20, 0.0  ;;  %v635_v24 = vadd.f32 %v634_v22, %v1608_v39 }
 0x1a7   :  { %v687_v41 = vadd.f32 %v1617_v47, %v633_v21 }
 0x1a8   :  { %v688_v25 = vadd.f32 %v1619_v49, %v635_v24  ;;  %v638_v36 = vpop.f32.mrb[28].mxu0  ;;  %888 = vmatprep.mubr.f32.mxu1 %v718_v23 }
 0x1a9   :  { %v639_v26 = vadd.f32 %v638_v36, %v1613_v45  ;;  %v640_v27 = vpop.f32.mrb[29].mxu0  ;;  %889 = vmatmul.mubr.f32.gmra.mrb[40].mxu1 %v717_v35  ;;  %v719_v38 = vmax.f32 %v687_v41, 0.0 }
 0x1aa   :  { %v720_v34 = vmax.f32 %v688_v25, 0.0  ;;  %v641_v37 = vadd.f32 %v640_v27, %v1615_v46 }
 0x1ab   :  { %v689_v42 = vadd.f32 %v1617_v47, %v639_v26 }
 0x1ac   :  { %v690_v43 = vadd.f32 %v1619_v49, %v641_v37  ;;  %v644_v39 = vpop.f32.mrb[30].mxu0  ;;  %893 = vmatprep.mubr.f32.mxu1 %v720_v34 }
 0x1ad   :  { %v645_v44 = vadd.f32 %v644_v39, %v1621_v50  ;;  %v646_v51 = vpop.f32.mrb[31].mxu0  ;;  %894 = vmatmul.mubr.f32.gmra.mrb[42].mxu1 %v719_v38  ;;  %v721_v45 = vmax.f32 %v689_v42, 0.0  ;;  %v1676_v50 = vld [vmem:[%s1719_s10] ss:$0 sm:$0xff]  ;;  %s1334_s10 = smov [#allocation11]  }
 0x1ae   :  { %v722_v53 = vmax.f32 %v690_v43, 0.0  ;;  %v647_v54 = vadd.f32 %v646_v51, %v1623_v52  ;;  %s930_s14 = sshll.u32 %s1334_s10, 4  ;;  %s931_s14 = int_to_ptr.vmem [resolvable:$true] %s930_s14 }
 0x1af   :  { %v691_v55 = vadd.f32 %v1617_v47, %v645_v44  ;;  %s1294_s16 = scalar_lea.vmem %s931_s14, 2048  ;;  %p1299_p13 = scmp.lt.s32.totalorder %s931_s14, %s931_s14 }
 0x1b0   :  { %v692_v56 = vadd.f32 %v1619_v49, %v647_v54  ;;  %898 = vmatprep.mubr.f32.mxu1 %v722_v53  ;;  %p1295_p12 = scmp.ne.s32.totalorder %s931_s14, %s1294_s16  ;;  %p1300_p0 = scmp.lt.s32.totalorder %s1294_s16, %s1294_s16 }
 0x1b1   :  { %899 = vmatmul.mubr.f32.gmra.mrb[44].mxu1 %v721_v45  ;;  %v723_v57 = vmax.f32 %v691_v55, 0.0 }
 0x1b2   :  { %v724_v46 = vmax.f32 %v692_v56, 0.0  ;;  %p1301_p1 = por %p1300_p0, %p1299_p13 }
 0x1b4   :  { %903 = vmatprep.mubr.f32.mxu1 %v724_v46  ;;  %p1302_p2 = pnand %p1301_p1, %p1295_p12 }
 0x1b5   :  { %904 = vmatmul.mubr.f32.gmra.mrb[46].mxu1 %v723_v57 }
 0x24a   :  { %v981_v58 = vpop.f32.mrb[16].mxu1 }
 0x24b   :  { %v982_v59 = vpop.f32.mrb[17].mxu1 }
 0x24c   :  { %v983_v60 = vadd.f32 %v982_v59, %v981_v58 }
 0x24e   :  { %v831_v52 = vadd.f32 %v983_v60, %v1676_v50  ;;  %v984_v61 = vpop.f32.mrb[18].mxu1 }
 0x24f   :  { %v985_v47 = vpop.f32.mrb[19].mxu1 }
 0x250   :  { %909 = vst [vmem:[#allocation11] sm:$0xff] %v831_v52  ;;  %v986_v49 = vadd.f32 %v985_v47, %v984_v61 }
 0x252   :  { %v836_v62 = vadd.f32 %v986_v49, %v1676_v50  ;;  %v987_v63 = vpop.f32.mrb[20].mxu1 }
 0x253   :  { %v988_v1 = vpop.f32.mrb[21].mxu1 }
 0x254   :  { %910 = vst [vmem:[#allocation11 + $0x8] sm:$0xff] %v836_v62  ;;  %v989_v2 = vadd.f32 %v988_v1, %v987_v63 }
 0x256   :  { %v841_v3 = vadd.f32 %v989_v2, %v1676_v50  ;;  %v990_v40 = vpop.f32.mrb[22].mxu1 }
 0x257   :  { %v991_v4 = vpop.f32.mrb[23].mxu1 }
 0x258   :  { %911 = vst [vmem:[#allocation11 + $0x10] sm:$0xff] %v841_v3  ;;  %v992_v28 = vadd.f32 %v991_v4, %v990_v40 }
 0x25a   :  { %v846_v5 = vadd.f32 %v992_v28, %v1676_v50  ;;  %v993_v6 = vpop.f32.mrb[24].mxu1 }
 0x25b   :  { %v994_v7 = vpop.f32.mrb[25].mxu1 }
 0x25c   :  { %912 = vst [vmem:[#allocation11 + $0x18] sm:$0xff] %v846_v5  ;;  %v995_v8 = vadd.f32 %v994_v7, %v993_v6 }
 0x25e   :  { %v851_v29 = vadd.f32 %v995_v8, %v1676_v50  ;;  %v996_v9 = vpop.f32.mrb[26].mxu1 }
 0x25f   :  { %v997_v0 = vpop.f32.mrb[27].mxu1 }
 0x260   :  { %913 = vst [vmem:[#allocation11 + $0x20] sm:$0xff] %v851_v29  ;;  %v998_v10 = vadd.f32 %v997_v0, %v996_v9 }
 0x262   :  { %v856_v11 = vadd.f32 %v998_v10, %v1676_v50  ;;  %v999_v12 = vpop.f32.mrb[28].mxu1 }
 0x263   :  { %v1000_v13 = vpop.f32.mrb[29].mxu1 }
 0x264   :  { %914 = vst [vmem:[#allocation11 + $0x28] sm:$0xff] %v856_v11  ;;  %v1001_v30 = vadd.f32 %v1000_v13, %v999_v12 }
 0x266   :  { %v861_v14 = vadd.f32 %v1001_v30, %v1676_v50  ;;  %v1002_v48 = vpop.f32.mrb[30].mxu1 }
 0x267   :  { %v1003_v31 = vpop.f32.mrb[31].mxu1 }
 0x268   :  { %915 = vst [vmem:[#allocation11 + $0x30] sm:$0xff] %v861_v14  ;;  %v1004_v15 = vadd.f32 %v1003_v31, %v1002_v48 }
 0x26a   :  { %v866_v16 = vadd.f32 %v1004_v15, %v1676_v50 }
 0x26c   :  { %916 = vst [vmem:[#allocation11 + $0x38] sm:$0xff] %v866_v16  ;;  %v1005_v17 = vpop.f32.mrb[32].mxu1 }
 0x26d   :  { %v1006_v18 = vpop.f32.mrb[33].mxu1 }
 0x26e   :  { %v1007_v32 = vadd.f32 %v1006_v18, %v1005_v17 }
 0x270   :  { %v871_v19 = vadd.f32 %v1007_v32, %v1676_v50  ;;  %v1008_v20 = vpop.f32.mrb[34].mxu1 }
 0x271   :  { %v1009_v33 = vpop.f32.mrb[35].mxu1 }
 0x272   :  { %917 = vst [vmem:[#allocation11 + $0x40] sm:$0xff] %v871_v19  ;;  %v1010_v21 = vadd.f32 %v1009_v33, %v1008_v20 }
 0x274   :  { %v876_v22 = vadd.f32 %v1010_v21, %v1676_v50  ;;  %v1011_v23 = vpop.f32.mrb[36].mxu1 }
 0x275   :  { %v1012_v24 = vpop.f32.mrb[37].mxu1 }
 0x276   :  { %918 = vst [vmem:[#allocation11 + $0x48] sm:$0xff] %v876_v22  ;;  %v1013_v35 = vadd.f32 %v1012_v24, %v1011_v23 }
 0x278   :  { %v881_v41 = vadd.f32 %v1013_v35, %v1676_v50  ;;  %v1014_v25 = vpop.f32.mrb[38].mxu1 }
 0x279   :  { %v1015_v36 = vpop.f32.mrb[39].mxu1 }
 0x27a   :  { %919 = vst [vmem:[#allocation11 + $0x50] sm:$0xff] %v881_v41  ;;  %v1016_v26 = vadd.f32 %v1015_v36, %v1014_v25 }
 0x27c   :  { %v886_v27 = vadd.f32 %v1016_v26, %v1676_v50  ;;  %v1017_v34 = vpop.f32.mrb[40].mxu1 }
 0x27d   :  { %v1018_v37 = vpop.f32.mrb[41].mxu1 }
 0x27e   :  { %920 = vst [vmem:[#allocation11 + $0x58] sm:$0xff] %v886_v27  ;;  %v1019_v38 = vadd.f32 %v1018_v37, %v1017_v34 }
 0x280   :  { %v891_v42 = vadd.f32 %v1019_v38, %v1676_v50  ;;  %v1020_v43 = vpop.f32.mrb[42].mxu1 }
 0x281   :  { %v1021_v39 = vpop.f32.mrb[43].mxu1 }
 0x282   :  { %921 = vst [vmem:[#allocation11 + $0x60] sm:$0xff] %v891_v42  ;;  %v1022_v44 = vadd.f32 %v1021_v39, %v1020_v43 }
 0x284   :  { %v896_v51 = vadd.f32 %v1022_v44, %v1676_v50  ;;  %v1023_v53 = vpop.f32.mrb[44].mxu1 }
 0x285   :  { %v1024_v54 = vpop.f32.mrb[45].mxu1 }
 0x286   :  { %922 = vst [vmem:[#allocation11 + $0x68] sm:$0xff] %v896_v51  ;;  %v1025_v45 = vadd.f32 %v1024_v54, %v1023_v53 }
 0x288   :  { %v901_v55 = vadd.f32 %v1025_v45, %v1676_v50  ;;  %v1026_v56 = vpop.f32.mrb[46].mxu1 }
 0x289   :  { %v1027_v46 = vpop.f32.mrb[47].mxu1 }
 0x28a   :  { %923 = vst [vmem:[#allocation11 + $0x70] sm:$0xff] %v901_v55  ;;  %v1028_v57 = vadd.f32 %v1027_v46, %v1026_v56 }
 0x28c   :  { %v906_v58 = vadd.f32 %v1028_v57, %v1676_v50 }
 0x28e   :  { %924 = vst [vmem:[#allocation11 + $0x78] sm:$0xff] %v906_v58 }
 0x28f   :  { %1305 = shalt.err (!%p1302_p2)
}
 0x290   :  { %s1306_s17 = scalar_lea.hbm %s1720_s11, 2048 }
 0x291   :  { %p1307_p3 = scmp.ne.s32.totalorder %s1720_s11, %s1306_s17  ;;  %p1310_p4 = scmp.lt.u32.totalorder %s1306_s17, %s1720_s11 }
 0x293   :  { %p1312_p5 = pnand %p1310_p4, %p1307_p3 }
 0x295   :  { %1315 = shalt.err (!%p1312_p5)
}
 0x296   :  { %936 = dma.vmem_to_hbm [thread:$0]  %s931_s14, 2048, %s1720_s11, [#allocation4], %s1325_s27, %s1325_s27, %s1326_s28  }
 0x297   :  { %1322 = dma.done.wait [#allocation4], 2048  }
 0x298   :  { %1323 = vsyncadd [#allocation4], 4294965248 }
 0x299   :  { %940 = vsyncpa [#allocation3], 1 }
 0x29a   :  { %941 = vsyncpa [#allocation6], 1 }
 0x29b   :  { %942 = vsyncpa [#allocation9], 1 }
 0x29c   :  { %943 = vsyncpa [#allocation4], 1 }

</bundles_post_ra>
